<compile_context>
chip_gen: v7x
topology: tpu7x:2x2x1
jax: 0.10.0
libtpu: 0.0.40
codegen_flags: <defaults>
</compile_context>

<pallas_src>
import functools

import jax
import jax.numpy as jnp
import numpy as np
from jax.experimental import pallas as pl
from jax.experimental.pallas import tpu as pltpu

EPS = 1e-5                      # nn.BatchNorm2d default eps
_VMEM_LIMIT = 32 * 1024 * 1024  # explicit scoped-VMEM limit (safe on v5e/v6e/v7x)


# --------------------------------------------------------------------- helpers
def _pick_row_tile(r, max_rows):
    """Largest tile <= max_rows that divides r and satisfies the (8,128) rule."""
    t = min(r, max_rows)
    for cand in range(t, 0, -1):
        if r % cand == 0 and (cand % 8 == 0 or cand == r):
            return cand
    return r


def _im2col_3x3(x_nhwc):
    """(N,H,W,C) -> (N*H*W, 9*C) patches for a stride-1, pad-1 3x3 conv.

    TODO(synk): im2col + zero pad are built with XLA glue in the wrapper (one
    extra HBM roundtrip of the activation); an in-kernel halo/Element-offset
    scheme would avoid it.
    """
    n, h, w, c = x_nhwc.shape
    xp = jnp.pad(x_nhwc, ((0, 0), (1, 1), (1, 1), (0, 0)))
    cols = [xp[:, dy:dy + h, dx:dx + w, :] for dy in range(3) for dx in range(3)]
    return jnp.concatenate(cols, axis=-1).reshape(n * h * w, 9 * c)


# ------------------------------------------ pass 1: tiled matmul + BN statistics
def _mm_stats_kernel(x_ref, w_ref, y_ref, stat_ref, *, relu_in):
    x = x_ref[...]
    if relu_in:                                    # fused leading ReLU
        x = jnp.maximum(x, jnp.zeros((), x.dtype))
    acc = jnp.dot(x, w_ref[...], preferred_element_type=jnp.float32)
    y_ref[...] = acc

    @pl.when(pl.program_id(0) == 0)
    def _():
        stat_ref[...] = jnp.zeros_like(stat_ref)

    s = jnp.sum(acc, axis=0, keepdims=True)
    ss = jnp.sum(acc * acc, axis=0, keepdims=True)
    stat_ref[...] += jnp.concatenate([s, ss], axis=0)


# --------------------------- pass 2: normalize + affine + relu + branch/skip add
def _bn_normalize(y, stat, g, b, cout_a, relu_out, nrows):
    inv_n = jnp.float32(1.0 / nrows)
    mean = stat[0:1, :] * inv_n
    var = jnp.maximum(stat[1:2, :] * inv_n - mean * mean, 0.0)   # biased variance
    norm = (y - mean) * jax.lax.rsqrt(var + EPS) * g + b
    main = norm[:, :cout_a]
    if relu_out:
        main = jnp.maximum(main, 0.0)
    if norm.shape[1] > cout_a:                     # fused downsample branch add
        main = main + norm[:, cout_a:]
    return main


def _bn_finish_kernel(y_ref, stat_ref, g_ref, b_ref, o_ref, *, cout_a, relu_out, nrows):
    out = _bn_normalize(y_ref[...], stat_ref[...], g_ref[...], b_ref[...],
                        cout_a, relu_out, nrows)
    o_ref[...] = out.astype(o_ref.dtype)


def _bn_finish_res_kernel(y_ref, stat_ref, g_ref, b_ref, res_ref, o_ref, *,
                          cout_a, relu_out, nrows):
    out = _bn_normalize(y_ref[...], stat_ref[...], g_ref[...], b_ref[...],
                        cout_a, relu_out, nrows) + res_ref[...]
    o_ref[...] = out.astype(o_ref.dtype)


# ----------------------------------------------------- generic fused stage call
def fused_matmul_bn_stage(x2d, w_a, g_a, b_a, *, w_b=None, g_b=None, b_b=None,
                          residual=None, relu_in=False, relu_out=True,
                          max_rows=512, compute_dtype=jnp.bfloat16):
    """out = [relu](bn_a(x @ w_a)) [+ bn_b(x @ w_b)] [+ residual].

    Train-mode BN (biased batch statistics) over the R = N*H*W rows, computed
    exactly under row tiling via a two-pass sum / sum-of-squares reduction.
    """
    r, k = x2d.shape
    cout_a = w_a.shape[1]
    if w_b is not None:
        w = jnp.concatenate([w_a, w_b], axis=1)              # one matmul, 2 branches
        g = jnp.concatenate([g_a.reshape(-1), g_b.reshape(-1)])
        b = jnp.concatenate([b_a.reshape(-1), b_b.reshape(-1)])
    else:
        w, g, b = w_a, g_a.reshape(-1), b_a.reshape(-1)
    ctot = w.shape[1]
    g = g.reshape(1, ctot).astype(jnp.float32)
    b = b.reshape(1, ctot).astype(jnp.float32)

    tile = _pick_row_tile(r, max_rows)
    grid = (r // tile,)
    cp_reduce = pltpu.CompilerParams(dimension_semantics=("arbitrary",),
                                     vmem_limit_bytes=_VMEM_LIMIT)
    cp_parallel = pltpu.CompilerParams(dimension_semantics=("parallel",),
                                       vmem_limit_bytes=_VMEM_LIMIT)

    # pass 1: tiled matmul + resident sum / sum-of-squares accumulator
    y, stat = pl.pallas_call(
        functools.partial(_mm_stats_kernel, relu_in=relu_in),
        grid=grid,
        in_specs=[pl.BlockSpec((tile, k), lambda i: (i, 0)),
                  pl.BlockSpec((k, ctot), lambda i: (0, 0))],
        out_specs=(pl.BlockSpec((tile, ctot), lambda i: (i, 0)),
                   pl.BlockSpec((2, ctot), lambda i: (0, 0))),
        out_shape=(jax.ShapeDtypeStruct((r, ctot), jnp.float32),
                   jax.ShapeDtypeStruct((2, ctot), jnp.float32)),
        compiler_params=cp_reduce,
    )(x2d.astype(compute_dtype), w.astype(compute_dtype))

    # pass 2: tiled normalize + affine + relu + branch add (+ residual add)
    common_in = [pl.BlockSpec((tile, ctot), lambda i: (i, 0)),
                 pl.BlockSpec((2, ctot), lambda i: (0, 0)),
                 pl.BlockSpec((1, ctot), lambda i: (0, 0)),
                 pl.BlockSpec((1, ctot), lambda i: (0, 0))]
    if residual is None:
        kernel = functools.partial(_bn_finish_kernel, cout_a=cout_a,
                                   relu_out=relu_out, nrows=r)
        args = (y, stat, g, b)
        in_specs = common_in
    else:
        kernel = functools.partial(_bn_finish_res_kernel, cout_a=cout_a,
                                   relu_out=relu_out, nrows=r)
        args = (y, stat, g, b, residual.astype(jnp.float32))
        in_specs = common_in + [pl.BlockSpec((tile, cout_a), lambda i: (i, 0))]

    return pl.pallas_call(
        kernel,
        grid=grid,
        in_specs=in_specs,
        out_specs=pl.BlockSpec((tile, cout_a), lambda i: (i, 0)),
        out_shape=jax.ShapeDtypeStruct((r, cout_a), jnp.float32),
        compiler_params=cp_parallel,
    )(*args)


# -------------------------------------------------------------------- parameters
def init_params(key, inplanes, planes, expansion=4):
    out_planes = planes * expansion
    ks = jax.random.split(key, 5)

    def conv_w(k, cin, cout, ksize=1):
        fan_in = cin * ksize * ksize
        return jax.random.normal(k, (ksize * ksize, cin, cout), jnp.float32) / jnp.sqrt(
            jnp.float32(fan_in))

    def bn(c):  # PyTorch BatchNorm2d affine init: gamma=1, beta=0
        return jnp.ones((c,), jnp.float32), jnp.zeros((c,), jnp.float32)

    g1, b1 = bn(planes)
    g2, b2 = bn(planes)
    g3, b3 = bn(out_planes)
    gd1, bd1 = bn(planes)
    gd3, bd3 = bn(out_planes)
    return dict(
        w1=conv_w(ks[0], inplanes, planes)[0], g1=g1, b1=b1,            # conv1 1x1
        wd1=conv_w(ks[1], inplanes, planes)[0], gd1=gd1, bd1=bd1,       # downsample1
        w2=conv_w(ks[2], planes, planes, ksize=3), g2=g2, b2=b2,        # conv2 3x3
        w3=conv_w(ks[3], planes, out_planes)[0], g3=g3, b3=b3,          # conv3 1x1
        wd3=conv_w(ks[4], planes, out_planes)[0], gd3=gd3, bd3=bd3,     # downsample3
    )


# ----------------------------------------------------------------------- forward
def shortenable_bottleneck(x_nchw, params, *, short_skip=True, stride=1,
                           max_rows=512, compute_dtype=jnp.bfloat16):
    # TODO(synk): stride != 1 (strided conv2 + downsample2) and an externally
    # supplied `downsample` module are not implemented in this synthetic kernel.
    # TODO(synk): channel dims are not padded to 128 lanes (beneficial at real
    # ResNet widths, overkill at these test sizes).
    assert stride == 1
    n, cin, h, w = x_nchw.shape
    planes = params["w1"].shape[1]
    out_planes = params["w3"].shape[1]

    x = jnp.transpose(x_nchw, (0, 2, 3, 1)).astype(jnp.float32)  # NCHW -> NHWC (glue)
    r = n * h * w
    xr = x.reshape(r, cin)

    # stage 1: relu(x) -> conv1 + bn1 + relu, fused with downsample1 branch + add
    if short_skip and cin != planes:
        o1 = fused_matmul_bn_stage(
            xr, params["w1"], params["g1"], params["b1"],
            w_b=params["wd1"], g_b=params["gd1"], b_b=params["bd1"],
            relu_in=True, relu_out=True,
            max_rows=max_rows, compute_dtype=compute_dtype)
    else:
        res = jnp.maximum(xr, 0.0) if short_skip else None     # identity = relu(x)
        o1 = fused_matmul_bn_stage(
            xr, params["w1"], params["g1"], params["b1"],
            relu_in=True, relu_out=True, residual=res,
            max_rows=max_rows, compute_dtype=compute_dtype)

    # stage 2: 3x3 conv (one K=9*Cin matmul via im2col) + bn2 + relu + 2nd skip
    xcol = _im2col_3x3(o1.reshape(n, h, w, planes))
    w2_flat = params["w2"].reshape(9 * planes, planes)
    o2 = fused_matmul_bn_stage(
        xcol, w2_flat, params["g2"], params["b2"],
        relu_in=False, relu_out=True,
        residual=o1 if short_skip else None,
        max_rows=max_rows, compute_dtype=compute_dtype)

    # stage 3: conv3 + bn3, fused with downsample3 branch + add (or long skip)
    if short_skip:
        o3 = fused_matmul_bn_stage(
            o2, params["w3"], params["g3"], params["b3"],
            w_b=params["wd3"], g_b=params["gd3"], b_b=params["bd3"],
            relu_in=False, relu_out=False,
            max_rows=max_rows, compute_dtype=compute_dtype)
    else:
        assert cin == out_planes, "third skip mismatch (downsample is None)"
        o3 = fused_matmul_bn_stage(
            o2, params["w3"], params["g3"], params["b3"],
            relu_in=False, relu_out=False, residual=jnp.maximum(xr, 0.0),
            max_rows=max_rows, compute_dtype=compute_dtype)

    return jnp.transpose(o3.reshape(n, h, w, out_planes), (0, 3, 1, 2))  # -> NCHW


# ------------------------------------------------------------- pure-JAX reference
def _ref_forward(x_nchw, params, compute_dtype=jnp.float32):
    """Same math as the kernels (short_skip=True, stride=1), matmul inputs cast
    to `compute_dtype`, everything else in f32."""
    cd = compute_dtype
    x = jnp.transpose(x_nchw, (0, 2, 3, 1)).astype(jnp.float32)
    n, h, w, cin = x.shape
    planes = params["w1"].shape[1]
    out_planes = params["w3"].shape[1]
    relu = lambda t: jnp.maximum(t, 0.0)

    def mm(a2d, wmat):
        return jnp.dot(a2d.astype(cd), wmat.astype(cd),
                       preferred_element_type=jnp.float32)

    def bn(y, g, b):
        mean = y.mean(axis=0, keepdims=True)
        var = jnp.mean((y - mean) ** 2, axis=0, keepdims=True)
        return (y - mean) * jax.lax.rsqrt(var + EPS) * g.reshape(1, -1) + b.reshape(1, -1)

    xr = relu(x).reshape(n * h * w, cin)
    o1 = relu(bn(mm(xr, params["w1"]), params["g1"], params["b1"])) \
        + bn(mm(xr, params["wd1"]), params["gd1"], params["bd1"])
    xcol = _im2col_3x3(o1.reshape(n, h, w, planes))
    o2 = relu(bn(mm(xcol, params["w2"].reshape(9 * planes, planes)),
                 params["g2"], params["b2"])) + o1
    o3 = bn(mm(o2, params["w3"]), params["g3"], params["b3"]) \
        + bn(mm(o2, params["wd3"]), params["gd3"], params["bd3"])
    return jnp.transpose(o3.reshape(n, h, w, out_planes), (0, 3, 1, 2))


if __name__ == "__main__":
    key = jax.random.PRNGKey(0)
    kx, kp = jax.random.split(key)
    N, inplanes, planes, H, W = 2, 16, 8, 16, 16          # R = N*H*W = 512 rows
    x = jax.random.normal(kx, (N, inplanes, H, W), jnp.float32)
    params = init_params(kp, inplanes, planes)

    # max_rows=128 -> 4 row tiles per stage: exercises the tiled two-pass BN path.
    y = shortenable_bottleneck(x, params, short_skip=True, max_rows=128,
                               compute_dtype=jnp.bfloat16)
    jax.block_until_ready(y)
    assert y.shape == (N, planes * 4, H, W)

    y_ref = _ref_forward(x, params, compute_dtype=jnp.bfloat16)
    np.testing.assert_allclose(np.asarray(y), np.asarray(y_ref), rtol=2e-2, atol=2e-2)

    print("KERNEL_OK")
</pallas_src>

<mosaic_0001>
module attributes {stable_mosaic.version = 11 : i64} {
  func.func @_mm_stats_kernel(%arg0: i32, %arg1: memref<128x16xbf16, #tpu.memory_space<vmem>>, %arg2: memref<16x16xbf16, #tpu.memory_space<vmem>>, %arg3: memref<128x16xf32, #tpu.memory_space<vmem>>, %arg4: memref<2x16xf32, #tpu.memory_space<vmem>>) attributes {dimension_semantics = [#tpu.dimension_semantics<arbitrary>], iteration_bounds = array<i64: 4>, scalar_prefetch = 0 : i64, scratch_operands = 0 : i64, tpu.core_type = #tpu.core_type<tc>, window_params = [{transform_indices = @transform_0, window_bounds = array<i64: 128, 16>}, {pipeline_mode = #tpu.pipeline_mode<synchronous>, transform_indices = @transform_1, window_bounds = array<i64: 16, 16>}, {transform_indices = @transform_2, window_bounds = array<i64: 128, 16>}, {pipeline_mode = #tpu.pipeline_mode<synchronous>, transform_indices = @transform_3, window_bounds = array<i64: 2, 16>}]} {
    %c0 = arith.constant 0 : index
    %c0_0 = arith.constant 0 : index
    %0 = vector.load %arg1[%c0, %c0_0] : memref<128x16xbf16, #tpu.memory_space<vmem>>, vector<128x16xbf16>
    %cst = arith.constant 0.000000e+00 : bf16
    %1 = vector.broadcast %cst : bf16 to vector<128x16xbf16>
    %2 = arith.maximumf %0, %1 : vector<128x16xbf16>
    %c0_1 = arith.constant 0 : index
    %c0_2 = arith.constant 0 : index
    %3 = vector.load %arg2[%c0_1, %c0_2] : memref<16x16xbf16, #tpu.memory_space<vmem>>, vector<16x16xbf16>
    %cst_3 = arith.constant dense<0.000000e+00> : vector<128x16xf32>
    %4 = tpu.matmul %2, %3, %cst_3 {dimension_numbers = #tpu.dot_dimension_numbers<[1], [0], [0], [1], [0, 0, 1, 1], [], []>} : vector<128x16xbf16>, vector<16x16xbf16>, vector<128x16xf32> -> vector<128x16xf32>
    %c0_4 = arith.constant 0 : index
    %c0_5 = arith.constant 0 : index
    %5 = vector.load %arg3[%c0_4, %c0_5] : memref<128x16xf32, #tpu.memory_space<vmem>>, vector<128x16xf32>
    tpu.vector_store %arg3[%c0_4, %c0_5], %4 {strides = array<i32>} : memref<128x16xf32, #tpu.memory_space<vmem>>, vector<128x16xf32>,
    %c0_i32 = arith.constant 0 : i32
    %6 = arith.cmpi eq, %arg0, %c0_i32 : i32
    %7 = arith.extui %6 : i1 to i32
    %c0_i32_6 = arith.constant 0 : i32
    %8 = arith.cmpi ne, %7, %c0_i32_6 : i32
    scf.if %8 {
      %cst_13 = arith.constant 0.000000e+00 : f32
      %18 = vector.broadcast %cst_13 : f32 to vector<2x16xf32>
      %c0_14 = arith.constant 0 : index
      %c0_15 = arith.constant 0 : index
      %19 = vector.load %arg4[%c0_14, %c0_15] : memref<2x16xf32, #tpu.memory_space<vmem>>, vector<2x16xf32>
      tpu.vector_store %arg4[%c0_14, %c0_15], %18 {strides = array<i32>} : memref<2x16xf32, #tpu.memory_space<vmem>>, vector<2x16xf32>,
    } else {
    }
    %cst_7 = arith.constant dense<0.000000e+00> : vector<16xf32>
    %9 = vector.multi_reduction <add>, %4, %cst_7 [0] : vector<128x16xf32> to vector<16xf32>
    %10 = vector.shape_cast %9 : vector<16xf32> to vector<1x16xf32>
    %11 = arith.mulf %4, %4 : vector<128x16xf32>
    %cst_8 = arith.constant dense<0.000000e+00> : vector<16xf32>
    %12 = vector.multi_reduction <add>, %11, %cst_8 [0] : vector<128x16xf32> to vector<16xf32>
    %13 = vector.shape_cast %12 : vector<16xf32> to vector<1x16xf32>
    %c0_9 = arith.constant 0 : index
    %c0_10 = arith.constant 0 : index
    %14 = vector.load %arg4[%c0_9, %c0_10] : memref<2x16xf32, #tpu.memory_space<vmem>>, vector<2x16xf32>
    %15 = tpu.concatenate %10, %13 in 0 : vector<1x16xf32>, vector<1x16xf32> -> vector<2x16xf32>
    %16 = arith.addf %14, %15 : vector<2x16xf32>
    %c0_11 = arith.constant 0 : index
    %c0_12 = arith.constant 0 : index
    %17 = vector.load %arg4[%c0_11, %c0_12] : memref<2x16xf32, #tpu.memory_space<vmem>>, vector<2x16xf32>
    tpu.vector_store %arg4[%c0_11, %c0_12], %16 {strides = array<i32>} : memref<2x16xf32, #tpu.memory_space<vmem>>, vector<2x16xf32>,
    return
  }
  func.func @transform_0(%arg0: i32) -> (i32, i32) {
    %c0_i32 = arith.constant 0 : i32
    %c0_i32_0 = arith.constant 0 : i32
    return %arg0, %c0_i32 : i32, i32
  }
  func.func @transform_1(%arg0: i32) -> (i32, i32) {
    %c0_i32 = arith.constant 0 : i32
    %c0_i32_0 = arith.constant 0 : i32
    %c0_i32_1 = arith.constant 0 : i32
    return %c0_i32, %c0_i32_0 : i32, i32
  }
  func.func @transform_2(%arg0: i32) -> (i32, i32) {
    %c0_i32 = arith.constant 0 : i32
    %c0_i32_0 = arith.constant 0 : i32
    return %arg0, %c0_i32 : i32, i32
  }
  func.func @transform_3(%arg0: i32) -> (i32, i32) {
    %c0_i32 = arith.constant 0 : i32
    %c0_i32_0 = arith.constant 0 : i32
    %c0_i32_1 = arith.constant 0 : i32
    return %c0_i32, %c0_i32_0 : i32, i32
  }
}

</mosaic_0001>

<bundles_post_ra>
// kernel: tpu_custom_call.1
= control target key start
LH: loop header
LB: loop body
LE: loop exit
PB: predicated region body
PF: predicated region fallthrough
CT: control target
= control target key end

     0   :  { %9 = vsyncpa [#allocation3], 0  ;;  %s713_s12 = smov 0   ;;  %s904_s0 = inlined_call_operand.vmem [shape: bf16[512,16], index: 0, kind: input, shape index: {}]   ;;  %s905_s1 = inlined_call_operand.vmem [shape: bf16[16,16], index: 1, kind: input, shape index: {}]   ;;  %s906_s2 = inlined_call_operand.vmem [shape: f32[512,16], index: 2, kind: output, shape index: {0}]   ;;  %s907_s3 = inlined_call_operand.hbm [shape: f32[2,16], index: 3, kind: output, shape index: {1}]  }
   0x1 LB: > { %s719_s13 = sadd.s32 4294967295, %s688_s12   ;;  %p578_p0 = scmp.ge.s32.totalorder %s688_s12, 1  ;;  %s688_s12 = sphi %s713_s12, %s15_s12  }
   0x2   : > { %p137_p1 = scmp.lt.s32.totalorder %s688_s12, 5 }
   0x4   : > { %p138_p2 = pnand %p578_p0, %p137_p1 }
   0x5   : > { %v651_v0 = vld [vmem:[%s905_s1] sm:$0xff] (!%p138_p2)   ;;  %s579_s16 = sshll.u32 (!%p138_p2), %s719_s13, 4  ;;  %vm254_vm0 = vcmask (!%p138_p2), 130048   ;;  %v690_v4 = vmov (!%p138_p2), 0   ;;  %p600_p4 = scmp.ne.s32.totalorder (!%p138_p2), %s719_s13, 0 }
   0x6   : > { %141 = sbr.rel (%p138_p2) target bundleno = 311 (0x137), region = 28  ;;  %p162_p3 = scmp.lt.s32.totalorder (!%p138_p2), %s579_s16, 63  ;;  %614 = vmatprep.subr.bf16.mxu0 (!%p138_p2), %v651_v0  ;;  %632 = vmatprep.subr.bf16.mxu1 (!%p138_p2), %v651_v0 }
   0x7   : > { %615 = vmatpush3.bf16.msra.mxu0 (!%p138_p2), %v651_v0  ;;  %633 = vmatpush3.bf16.msra.mxu1 (!%p138_p2), %v651_v0 }
   0xd   : > { %s909_s16 = smov (!%p162_p3, %s579_s16), 63  ;;  %vm396_vm1 = vcmask (!%p600_p4), 123904   ;;  %v691_v58 = vmov (!%p600_p4), 0.0  }
   0xe   : > { %s580_s17 = sshll.u32 %s909_s16, 2  ;;  %s582_s21 = sshll.u32 %s909_s16, 3  ;;  %397 = vst.msk [vmem:[#allocation2] sm:$0x3] (!%p600_p4), %vm396_vm1, %v691_v58 }
   0xf   : > { %s733_s20 = scalar_lea.vmem %s904_s0, %s580_s17  ;;  %s763_s24 = scalar_lea.vmem %s906_s2, %s582_s21 }
  0x10   : > { %v174_v1 = vld [vmem:[%s733_s20] sm:$0xf]  ;;  %v175_v2 = vld [vmem:[%s733_s20 + $0x4] sm:$0xf]  ;;  %v176_v9 = vld [vmem:[%s733_s20 + $0x8] sm:$0xf] }
  0x11   : > { %v182_v3 = vld [vmem:[%s733_s20 + $0x20] sm:$0xf]  ;;  %v190_v5 = vmax.bf16 %v690_v4, %v174_v1  ;;  %v191_v6 = vmax.bf16 %v690_v4, %v175_v2  ;;  %v183_v7 = vld [vmem:[%s733_s20 + $0x24] sm:$0xf]  ;;  %v177_v10 = vld [vmem:[%s733_s20 + $0xc] sm:$0xf]  ;;  %v192_v12 = vmax.bf16 %v690_v4, %v176_v9 }
  0x12   : > { %v198_v8 = vmax.bf16 %v690_v4, %v182_v3  ;;  %v199_v11 = vmax.bf16 %v690_v4, %v183_v7  ;;  %v193_v13 = vmax.bf16 %v690_v4, %v177_v10  ;;  %v184_v14 = vld [vmem:[%s733_s20 + $0x28] sm:$0xf]  ;;  %v185_v15 = vld [vmem:[%s733_s20 + $0x2c] sm:$0xf]  ;;  %v178_v16 = vld [vmem:[%s733_s20 + $0x10] sm:$0xf] }
  0x13   : > { %v583_v17 = vcombine.low %v190_v5, %v191_v6  ;;  %v200_v18 = vmax.bf16 %v690_v4, %v184_v14  ;;  %v201_v19 = vmax.bf16 %v690_v4, %v185_v15  ;;  %v179_v20 = vld [vmem:[%s733_s20 + $0x14] sm:$0xf]  ;;  %v194_v21 = vmax.bf16 %v690_v4, %v178_v16  ;;  %v186_v22 = vld [vmem:[%s733_s20 + $0x30] sm:$0xf]  ;;  %v180_v28 = vld [vmem:[%s733_s20 + $0x18] sm:$0xf] }
  0x14   : > { %v187_v23 = vld [vmem:[%s733_s20 + $0x34] sm:$0xf]  ;;  %v587_v24 = vcombine.low %v198_v8, %v199_v11  ;;  %v584_v25 = vcombine.low %v192_v12, %v193_v13  ;;  %v195_v26 = vmax.bf16 %v690_v4, %v179_v20  ;;  %v202_v27 = vmax.bf16 %v690_v4, %v186_v22  ;;  %v181_v29 = vld [vmem:[%s733_s20 + $0x1c] sm:$0xf]  ;;  %v188_v30 = vld [vmem:[%s733_s20 + $0x38] sm:$0xf] }
  0x15   : > { %616 = vmatprep.mubr.msk.bf16.mxu0 %vm254_vm0, %v583_v17  ;;  %v588_v31 = vcombine.low %v200_v18, %v201_v19  ;;  %v203_v32 = vmax.bf16 %v690_v4, %v187_v23  ;;  %v189_v33 = vld [vmem:[%s733_s20 + $0x3c] sm:$0xf]  ;;  %v196_v35 = vmax.bf16 %v690_v4, %v180_v28  ;;  %v197_v36 = vmax.bf16 %v690_v4, %v181_v29 }
  0x16   : > { %624 = vmatprep.mubr.msk.bf16.mxu1 %vm254_vm0, %v587_v24  ;;  %617 = vmatmul.mubr.msk.bf16.vlgmr.msra.gmra.mrb[0].mxu0 %vm254_vm0, %v584_v25  ;;  %v585_v34 = vcombine.low %v194_v21, %v195_v26  ;;  %v204_v38 = vmax.bf16 %v690_v4, %v188_v30  ;;  %v205_v39 = vmax.bf16 %v690_v4, %v189_v33 }
  0x17   : > { %625 = vmatmul.mubr.msk.bf16.vlgmr.msra.gmra.mrb[0].mxu1 %vm254_vm0, %v588_v31  ;;  %v589_v37 = vcombine.low %v202_v27, %v203_v32  ;;  %v586_v40 = vcombine.low %v196_v35, %v197_v36 }
  0x18   : > { %620 = vmatprep.mubr.msk.bf16.mxu0 %vm254_vm0, %v585_v34  ;;  %v590_v41 = vcombine.low %v204_v38, %v205_v39 }
  0x19   : > { %628 = vmatprep.mubr.msk.bf16.mxu1 %vm254_vm0, %v589_v37 }
  0x1e   : > { %621 = vmatmul.mubr.msk.bf16.gmra.mrb[4].mxu0 %vm254_vm0, %v586_v40 }
  0x1f   : > { %629 = vmatmul.mubr.msk.bf16.gmra.mrb[4].mxu1 %vm254_vm0, %v590_v41 }
  0xe9   : > { %v618_v42 = vpop.f32.mrb[0].mxu0 }
  0xea   : > { %378 = vst.msk [vmem:[%s763_s24 + $0x10] sm:$0xff] %vm254_vm0, %v618_v42  ;;  %v767_v43 = vpop.f32.mrb[0].mxu1  ;;  %v313_v44 = vpop.f32.mrb[1].mxu0 }
  0xeb   : > { %386 = vst.msk [vmem:[%s763_s24 + $0x50] sm:$0xff] %vm254_vm0, %v767_v43  ;;  %376 = vst.msk [vmem:[%s763_s24] sm:$0xff] %vm254_vm0, %v313_v44  ;;  %v774_v45 = vpop.f32.mrb[1].mxu1  ;;  %v619_v46 = vpop.f32.mrb[2].mxu0 }
  0xec   : > { %384 = vst.msk [vmem:[%s763_s24 + $0x40] sm:$0xff] %vm254_vm0, %v774_v45  ;;  %379 = vst.msk [vmem:[%s763_s24 + $0x18] sm:$0xff] %vm254_vm0, %v619_v46  ;;  %v781_v47 = vpop.f32.mrb[2].mxu1  ;;  %v316_v48 = vpop.f32.mrb[3].mxu0 }
  0xed   : > { %387 = vst.msk [vmem:[%s763_s24 + $0x58] sm:$0xff] %vm254_vm0, %v781_v47  ;;  %377 = vst.msk [vmem:[%s763_s24 + $0x8] sm:$0xff] %vm254_vm0, %v316_v48  ;;  %v788_v49 = vpop.f32.mrb[3].mxu1 }
  0xee   : > { %385 = vst.msk [vmem:[%s763_s24 + $0x48] sm:$0xff] %vm254_vm0, %v788_v49 }
  0xf0   : > { %395 = sbr.rel (%p600_p4) target bundleno = 247 (0xf7), region = 32 }
  0xf1   : > { %v622_v50 = vpop.f32.mrb[4].mxu0 }
  0xf2   : > { %382 = vst.msk [vmem:[%s763_s24 + $0x30] sm:$0xff] %vm254_vm0, %v622_v50  ;;  %v795_v51 = vpop.f32.mrb[4].mxu1  ;;  %v329_v52 = vpop.f32.mrb[5].mxu0 }
  0xf3   : > { %390 = vst.msk [vmem:[%s763_s24 + $0x70] sm:$0xff] %vm254_vm0, %v795_v51  ;;  %380 = vst.msk [vmem:[%s763_s24 + $0x20] sm:$0xff] %vm254_vm0, %v329_v52  ;;  %v802_v53 = vpop.f32.mrb[5].mxu1  ;;  %v623_v54 = vpop.f32.mrb[6].mxu0 }
  0xf4   : > { %388 = vst.msk [vmem:[%s763_s24 + $0x60] sm:$0xff] %vm254_vm0, %v802_v53  ;;  %383 = vst.msk [vmem:[%s763_s24 + $0x38] sm:$0xff] %vm254_vm0, %v623_v54  ;;  %v809_v55 = vpop.f32.mrb[6].mxu1  ;;  %v332_v56 = vpop.f32.mrb[7].mxu0 }
  0xf5   : > { %391 = vst.msk [vmem:[%s763_s24 + $0x78] sm:$0xff] %vm254_vm0, %v809_v55  ;;  %381 = vst.msk [vmem:[%s763_s24 + $0x28] sm:$0xff] %vm254_vm0, %v332_v56  ;;  %v816_v57 = vpop.f32.mrb[7].mxu1 }
  0xf6   : > { %389 = vst.msk [vmem:[%s763_s24 + $0x68] sm:$0xff] %vm254_vm0, %v816_v57 }
  0xf7 PF: > { %v398_v59 = vsel %vm254_vm0, %v313_v44, 0.0  ;;  %v399_v60 = vsel %vm254_vm0, %v316_v48, 0.0  ;;  %v401_v61 = vsel %vm254_vm0, %v618_v42, 0.0  ;;  %v403_v63 = vsel %vm254_vm0, %v619_v46, 0.0  ;;  %s692_s25 = smov [#allocation2]   ;;  %p638_p5 = scmp.eq.s32.totalorder %s719_s13, 3 }
  0xf8   : > { %v400_v62 = vadd.f32 %v399_v60, %v398_v59  ;;  %v405_v1 = vsel %vm254_vm0, %v329_v52, 0.0  ;;  %v435_v3 = vmul.f32 %v313_v44, %v313_v44  ;;  %v436_v4 = vmul.f32 %v316_v48, %v316_v48  ;;  %s510_s26 = sshll.u32 %s692_s25, 4  ;;  %s511_s26 = int_to_ptr.vmem [resolvable:$true] %s510_s26 }
  0xf9   : > { %v437_v5 = vmul.f32 %v618_v42, %v618_v42  ;;  %v407_v6 = vsel %vm254_vm0, %v332_v56, 0.0  ;;  %v438_v8 = vmul.f32 %v619_v46, %v619_v46  ;;  %v409_v9 = vsel %vm254_vm0, %v622_v50, 0.0  ;;  %s652_s27 = scalar_lea.vmem %s511_s26, 32  ;;  %p659_p9 = scmp.lt.s32.totalorder %s511_s26, %s511_s26 }
  0xfa   : > { %v402_v0 = vadd.f32 %v401_v61, %v400_v62  ;;  %v439_v10 = vmul.f32 %v329_v52, %v329_v52  ;;  %v451_v12 = vsel %vm254_vm0, %v435_v3, 0.0  ;;  %v452_v13 = vsel %vm254_vm0, %v436_v4, 0.0  ;;  %p653_p6 = scmp.ne.s32.totalorder %s511_s26, %s652_s27  ;;  %p660_p10 = scmp.lt.s32.totalorder %s652_s27, %s652_s27 }
  0xfb   : > { %v454_v14 = vsel %vm254_vm0, %v437_v5, 0.0  ;;  %v411_v15 = vsel %vm254_vm0, %v623_v54, 0.0  ;;  %v453_v16 = vadd.f32 %v452_v13, %v451_v12  ;;  %v440_v18 = vmul.f32 %v332_v56, %v332_v56 }
  0xfc   : > { %v404_v2 = vadd.f32 %v403_v63, %v402_v0  ;;  %v456_v19 = vsel %vm254_vm0, %v438_v8, 0.0  ;;  %v413_v20 = vsel %vm254_vm0, %v774_v45, 0.0  ;;  %v441_v23 = vmul.f32 %v622_v50, %v622_v50  ;;  %p654_p7 = pnand %p653_p6, %p638_p5  ;;  %p661_p11 = por %p660_p10, %p659_p9 }
  0xfd   : > { %v455_v21 = vadd.f32 %v454_v14, %v453_v16  ;;  %v458_v24 = vsel %vm254_vm0, %v439_v10, 0.0  ;;  %v415_v25 = vsel %vm254_vm0, %v788_v49, 0.0  ;;  %v442_v28 = vmul.f32 %v623_v54, %v623_v54 }
  0xfe   : > { %v406_v7 = vadd.f32 %v405_v1, %v404_v2  ;;  %v460_v29 = vsel %vm254_vm0, %v440_v18, 0.0  ;;  %v417_v30 = vsel %vm254_vm0, %v767_v43, 0.0  ;;  %v443_v33 = vmul.f32 %v774_v45, %v774_v45  ;;  %p655_p8 = pneg %p654_p7 }
  0xff   : > { %v457_v26 = vadd.f32 %v456_v19, %v455_v21  ;;  %v462_v34 = vsel %vm254_vm0, %v441_v23, 0.0  ;;  %v419_v35 = vsel %vm254_vm0, %v781_v47, 0.0  ;;  %v444_v38 = vmul.f32 %v788_v49, %v788_v49  ;;  %v488_v21 = vld [vmem:[#allocation2] sm:$0x3] }
 0x100   : > { %v408_v11 = vadd.f32 %v407_v6, %v406_v7  ;;  %v464_v39 = vsel %vm254_vm0, %v442_v28, 0.0  ;;  %v421_v40 = vsel %vm254_vm0, %v802_v53, 0.0  ;;  %v445_v44 = vmul.f32 %v767_v43, %v767_v43  ;;  %p662_p12 = pnand %p661_p11, %p655_p8 }
 0x101   : > { %v459_v31 = vadd.f32 %v458_v24, %v457_v26  ;;  %v466_v45 = vsel %vm254_vm0, %v443_v33, 0.0  ;;  %v423_v46 = vsel %vm254_vm0, %v816_v57, 0.0  ;;  %v446_v49 = vmul.f32 %v781_v47, %v781_v47 }
 0x102   : > { %v410_v17 = vadd.f32 %v409_v9, %v408_v11  ;;  %v468_v52 = vsel %vm254_vm0, %v444_v38, 0.0  ;;  %v425_v54 = vsel %vm254_vm0, %v795_v51, 0.0  ;;  %v447_v43 = vmul.f32 %v802_v53, %v802_v53 }
 0x103   : > { %v461_v36 = vadd.f32 %v460_v29, %v459_v31  ;;  %v470_v59 = vsel %vm254_vm0, %v445_v44, 0.0  ;;  %v427_v60 = vsel %vm254_vm0, %v809_v55, 0.0  ;;  %v448_v47 = vmul.f32 %v816_v57, %v816_v57 }
 0x104   : > { %v412_v22 = vadd.f32 %v411_v15, %v410_v17  ;;  %v472_v63 = vsel %vm254_vm0, %v446_v49, 0.0  ;;  %v449_v2 = vmul.f32 %v795_v51, %v795_v51  ;;  %v474_v3 = vsel %vm254_vm0, %v447_v43, 0.0 }
 0x105   : > { %v463_v41 = vadd.f32 %v462_v34, %v461_v36  ;;  %v450_v5 = vmul.f32 %v809_v55, %v809_v55  ;;  %v476_v6 = vsel %vm254_vm0, %v448_v47, 0.0  ;;  %vm489_vm2 = vcmask 1040384  }
 0x106   : > { %v414_v27 = vadd.f32 %v413_v20, %v412_v22  ;;  %v478_v57 = vsel %vm254_vm0, %v449_v2, 0.0  ;;  %vm492_vm3 = vcmask 123904  }
 0x107   : > { %v465_v48 = vadd.f32 %v464_v39, %v463_v41  ;;  %v480_v10 = vsel %vm254_vm0, %v450_v5, 0.0 }
 0x108   : > { %v416_v32 = vadd.f32 %v415_v25, %v414_v27 }
 0x109   : > { %v467_v56 = vadd.f32 %v466_v45, %v465_v48 }
 0x10a   : > { %v418_v37 = vadd.f32 %v417_v30, %v416_v32 }
 0x10b   : > { %v469_v61 = vadd.f32 %v468_v52, %v467_v56 }
 0x10c   : > { %v420_v42 = vadd.f32 %v419_v35, %v418_v37 }
 0x10d   : > { %v471_v0 = vadd.f32 %v470_v59, %v469_v61 }
 0x10e   : > { %v422_v50 = vadd.f32 %v421_v40, %v420_v42 }
 0x10f   : > { %v473_v53 = vadd.f32 %v472_v63, %v471_v0 }
 0x110   : > { %v424_v58 = vadd.f32 %v423_v46, %v422_v50 }
 0x111   : > { %v475_v7 = vadd.f32 %v474_v3, %v473_v53 }
 0x112   : > { %v426_v62 = vadd.f32 %v425_v54, %v424_v58 }
 0x113   : > { %v477_v9 = vadd.f32 %v476_v6, %v475_v7 }
 0x114   : > { %v428_v1 = vadd.f32 %v427_v60, %v426_v62 }
 0x115   : > { %v479_v12 = vadd.f32 %v478_v57, %v477_v9 }
 0x116   : > { %v429_v4 = vrot.slane %v428_v1, 4 }
 0x117   : > { %v481_v13 = vadd.f32 %v480_v10, %v479_v12 }
 0x118   : > { %v430_v8 = vadd.f32 %v429_v4, %v428_v1 }
 0x119   : > { %v482_v14 = vrot.slane %v481_v13, 4 }
 0x11a   : > { %v431_v11 = vrot.slane %v430_v8, 2 }
 0x11b   : > { %v483_v15 = vadd.f32 %v482_v14, %v481_v13 }
 0x11c   : > { %v432_v51 = vadd.f32 %v431_v11, %v430_v8 }
 0x11d   : > { %v484_v17 = vrot.slane %v483_v15, 2 }
 0x11e   : > { %v433_v16 = vrot.slane %v432_v51, 1 }
 0x11f   : > { %v485_v18 = vadd.f32 %v484_v17, %v483_v15 }
 0x120   : > { %v434_v55 = vadd.f32 %v433_v16, %v432_v51 }
 0x121   : > { %v486_v19 = vrot.slane %v485_v18, 1 }
 0x123   : > { %v487_v20 = vadd.f32 %v486_v19, %v485_v18 }
 0x125   : > { %v490_v22 = vsel %vm489_vm2, %v434_v55, %v487_v20 }
 0x126   : > { %v491_v23 = vadd.f32 %v490_v22, %v488_v21 }
 0x128   : > { %493 = vst.msk [vmem:[#allocation2] sm:$0x3] %vm492_vm3, %v491_v23 }
 0x129   : > { %665 = shalt.err (!%p662_p12)
}
 0x12a   : > { %s666_s30 = scalar_lea.hbm %s907_s3, 32 }
 0x12b   : > { %p667_p13 = scmp.ne.s32.totalorder %s907_s3, %s666_s30  ;;  %p672_p2 = scmp.lt.u32.totalorder %s666_s30, %s907_s3 }
 0x12d   : > { %p668_p0 = pnand %p667_p13, %p638_p5 }
 0x12f   : > { %p669_p1 = pneg %p668_p0 }
 0x131   : > { %p674_p3 = pnand %p672_p2, %p669_p1 }
 0x133   : > { %677 = shalt.err (!%p674_p3)
}
 0x134   : > { %635 = dma.vmem_to_hbm [thread:$0]  (%p638_p5), %s511_s26, 32, %s907_s3, [#allocation3]  }
 0x135   : > { %683 = dma.done.wait (%p638_p5), [#allocation3], 32  }
 0x136   : > { %685 = vsyncadd (%p638_p5), [#allocation3], 4294967264 }
 0x137 PF: > { %s15_s12 = sadd.s32 1, %s688_s12  }
 0x138   : > { %p12_p4 = scmp.ge.s32.totalorder %s15_s12, 6  }
 0x13a   :  { %14 = sbr.rel (!%p12_p4) target bundleno = 1 (0x1), region = 71 }
 0x141   :  { %531 = vsyncpa [#allocation3], 1 }
 0x142   :  { %533 = vsyncpa [#allocation3 + $0x1], 1 }

</bundles_post_ra>
